<compile_context>
chip_gen: v7x
topology: tpu7x:2x2x1
jax: 0.10.0
libtpu: 0.0.40
codegen_flags: <defaults>
</compile_context>

<pallas_src>
import numpy as np

import jax
import jax.numpy as jnp
from jax import lax
from jax.experimental import pallas as pl
from jax.experimental.pallas import tpu as pltpu

NUM_AA = 21        # amino-acid alphabet size used by BaseModel.embed
_LANE = 128        # TPU lane width
_SUBLANE = 8       # 32-bit sublane granularity


def _round_up(x, m):
    return ((x + m - 1) // m) * m


def _choose_l_tiling(seq_len, tile_l):
    """L_pad rounds to 128 only; tile = largest 128-multiple divisor of L_pad <= tile_l."""
    l_pad = _round_up(max(int(seq_len), 1), _LANE)
    max_units = max(1, int(tile_l) // _LANE)
    units = l_pad // _LANE
    best = 1
    for d in range(1, units + 1):
        if units % d == 0 and d <= max_units:
            best = d
    return l_pad, best * _LANE


def _choose_batch_block(batch, num_classes, tile, out_itemsize,
                        target_bytes=2 << 20):
    """Batch block: multiple of 8 (sublane rule on the int32 input block) or the
    full batch; smallest candidate whose output block reaches ~2 MiB, else the
    full batch."""
    cands = {batch}
    m = _SUBLANE
    while m < batch:
        if batch % m == 0:
            cands.add(m)
        m *= 2

    def blk_bytes(bb):
        return bb * num_classes * tile * out_itemsize

    for bb in sorted(cands):
        if blk_bytes(bb) >= target_bytes:
            return bb
    return max(cands)


def _plan_tiling(batch, seq_len, num_classes, tile_l, out_dtype,
                 vmem_block_budget=6 << 20):
    """Return (l_pad, tile, batch_block) for the one-hot kernel."""
    l_pad, tile = _choose_l_tiling(seq_len, tile_l)
    out_itemsize = jnp.dtype(out_dtype).itemsize
    bb = _choose_batch_block(batch, num_classes, tile, out_itemsize)

    units_total = l_pad // _LANE

    def total_block_bytes(t):
        return bb * t * 4 + bb * num_classes * t * out_itemsize

    # Keep the per-block (input + output) footprint under a few MiB so the
    # double-buffered total stays inside every generation's scoped VMEM default.
    while total_block_bytes(tile) > vmem_block_budget and tile > _LANE:
        units_now = tile // _LANE
        smaller = [d for d in range(1, units_now) if units_total % d == 0]
        tile = max(smaller) * _LANE

    # v7x has two TensorCores: guarantee >=2 "parallel" grid steps whenever the
    # sequence axis can be split, so the grid shards across both.
    if (batch // bb) * (l_pad // tile) == 1 and units_total >= 2:
        d = max(d for d in range(1, units_total) if units_total % d == 0)
        tile = d * _LANE

    return l_pad, tile, bb


def _onehot_kernel(data_ref, out_ref):
    # data_ref: (bb, tile)            int32  -- sequence axis on lanes
    # out_ref : (bb, NUM_AA, tile)           -- classes on sublanes, sequence on
    #                                           lanes => dense stores
    data = data_ref[...]
    cls = lax.broadcasted_iota(jnp.int32, out_ref.shape, 1)   # class index
    out_ref[...] = (cls == data[:, None, :]).astype(out_ref.dtype)


def onehot_embed_lane_dense(data, *, num_classes=NUM_AA, tile_l=2048,
                            out_dtype=jnp.bfloat16):
    """One-hot encode data (batch, seq_len) int32 -> (batch, num_classes, L_pad).

    Lane-dense layout: sequence axis last (lanes), class axis on sublanes.
    L_pad rounds seq_len up to a multiple of 128 only; extra columns carry the
    one-hot of token 0, i.e. the same encoding the reference gives to padding.
    """
    assert data.ndim == 2 and data.dtype == jnp.int32
    batch, seq_len = data.shape

    l_pad, tile, bb = _plan_tiling(batch, seq_len, num_classes, tile_l, out_dtype)
    if l_pad != seq_len:
        # Callers that pre-pad (see BaseModelPallas.embed_lane_dense) skip this.
        data = jnp.pad(data, ((0, 0), (0, l_pad - seq_len)))

    grid = (batch // bb, l_pad // tile)

    out_itemsize = jnp.dtype(out_dtype).itemsize
    in_bytes = batch * l_pad * 4
    out_bytes = batch * num_classes * l_pad * out_itemsize
    block_bytes = bb * tile * 4 + bb * num_classes * tile * out_itemsize
    # Only raise the scoped-VMEM limit if the double-buffered footprint would
    # not fit the smallest default (16 MiB on v5e); cap well under v7x's 64 MiB.
    vmem_limit = None
    if 2 * block_bytes > (14 << 20):
        vmem_limit = int(min(48 << 20, 2 * block_bytes + (8 << 20)))

    return pl.pallas_call(
        _onehot_kernel,
        out_shape=jax.ShapeDtypeStruct((batch, num_classes, l_pad), out_dtype),
        grid_spec=pltpu.PrefetchScalarGridSpec(
            num_scalar_prefetch=0,
            grid=grid,
            # Input block (bb, tile): bb is a multiple of 8 or the full batch and
            # tile is a multiple of 128. Output block (bb, 21, tile): the minor
            # two dims are (full class dim, 128-multiple) — (8,128) rule holds.
            in_specs=[pl.BlockSpec((bb, tile), lambda b, i: (b, i))],
            out_specs=pl.BlockSpec((bb, num_classes, tile),
                                   lambda b, i: (b, 0, i)),
        ),
        compiler_params=pltpu.CompilerParams(
            dimension_semantics=("parallel", "parallel"),
            vmem_limit_bytes=vmem_limit),
        cost_estimate=pl.CostEstimate(
            flops=batch * num_classes * l_pad,   # compare + select per element
            transcendentals=0,
            bytes_accessed=in_bytes + out_bytes),
    )(data)


class BaseModelPallas:
    """JAX/Pallas port of the concrete parts of openprotein.BaseModel."""

    def __init__(self, use_gpu, embedding_size):
        self.use_gpu = use_gpu                  # kept for API parity (unused on TPU)
        self.embedding_size = embedding_size
        self.historical_rmsd_avg_values = []
        self.historical_drmsd_avg_values = []

    def get_embedding_size(self):
        return self.embedding_size

    @staticmethod
    def _pad_and_stack(original_aa_string, pad_to):
        # Host-side numpy padding: a single H2D transfer instead of O(batch)
        # tiny concat/stack/transpose XLA ops.
        batch = len(original_aa_string)
        buf = np.zeros((batch, pad_to), dtype=np.int32)
        for b, s in enumerate(original_aa_string):
            a = np.asarray(s, dtype=np.int32)
            buf[b, : a.shape[0]] = a
        return jnp.asarray(buf)

    def embed_lane_dense(self, original_aa_string, *, tile_l=2048,
                         out_dtype=jnp.bfloat16):
        """Fast path. Returns ((batch, 21, L_pad) one-hot, max_len).

        Downstream code should consume this layout directly (sequence on the
        lane axis). Columns >= max_len encode the pad token (class 0); any
        downstream loss/softmax must mask by sequence length.
        """
        max_len = max(int(s.shape[0]) for s in original_aa_string)
        l_pad = _round_up(max_len, _LANE)
        data = self._pad_and_stack(original_aa_string, l_pad)     # (batch, L_pad)
        dense = onehot_embed_lane_dense(data, tile_l=tile_l, out_dtype=out_dtype)
        return dense, max_len

    def embed(self, original_aa_string, *, tile_l=2048):
        """Compatibility path: PyTorch-identical (max_len, batch, 21) float32.

        NOTE: the trailing slice + transpose re-reads/re-writes the whole one-hot
        through HBM and puts the 21-class axis on lanes — it costs more than the
        kernel itself. Prefer embed_lane_dense() whenever the consumer can take
        the lane-dense layout (or fuse the transpose into the consumer).
        """
        dense, max_len = self.embed_lane_dense(
            original_aa_string, tile_l=tile_l, out_dtype=jnp.float32)
        out = jnp.transpose(dense[:, :, :max_len], (2, 0, 1))
        assert out.dtype == jnp.float32   # exact dtype parity with the reference
        return out

    def forward(self, original_aa_string):
        # TODO(synk): forward() delegates to the abstract _get_network_emissions();
        # only the concrete embedding hot path is implemented here.
        return self.embed(original_aa_string)

    __call__ = forward


if __name__ == "__main__":
    key = jax.random.PRNGKey(0)
    k1, k2, k3, k4 = jax.random.split(key, 4)

    model = BaseModelPallas(use_gpu=False, embedding_size=NUM_AA)

    # ---- Small case: exact parity with the PyTorch semantics -------------
    seq_a = jax.random.randint(k1, (8,), 1, NUM_AA, dtype=jnp.int32)
    seq_b = jax.random.randint(k2, (5,), 1, NUM_AA, dtype=jnp.int32)

    emb = model([seq_a, seq_b])                 # (max_len, batch, 21) float32
    emb = jax.block_until_ready(emb)

    padded = jnp.stack(
        [seq_a, jnp.concatenate([seq_b, jnp.zeros((3,), jnp.int32)])]).T
    ref = (jnp.arange(NUM_AA, dtype=jnp.int32)[None, None, :]
           == padded[:, :, None]).astype(jnp.float32)

    assert emb.shape == (8, 2, NUM_AA), emb.shape
    assert emb.dtype == jnp.float32
    assert bool(jnp.all(emb == ref))

    # ---- Lane-dense fast path: multi-step parallel grid, bf16 default ----
    lens = [345, 512, 200, 480]
    seqs = [jax.random.randint(jax.random.fold_in(k3, i), (l,), 1, NUM_AA,
                               dtype=jnp.int32)
            for i, l in enumerate(lens)]

    dense, max_len = model.embed_lane_dense(seqs, tile_l=256)   # grid = (1, 2)
    dense = jax.block_until_ready(dense)
    assert dense.shape == (4, NUM_AA, 512), dense.shape
    assert dense.dtype == jnp.bfloat16          # default narrow, lossless output
    assert max_len == 512

    padded2 = np.zeros((4, max_len), dtype=np.int32)
    for b, s in enumerate(seqs):
        padded2[b, :lens[b]] = np.asarray(s)
    ref2 = (np.arange(NUM_AA, dtype=np.int32)[None, :, None]
            == padded2[:, None, :]).astype(np.float32)
    assert np.array_equal(
        np.asarray(dense[:, :, :max_len].astype(jnp.float32)), ref2)

    # Explicit float32 output still available.
    dense_f32, _ = model.embed_lane_dense(seqs, tile_l=256,
                                          out_dtype=jnp.float32)
    dense_f32 = jax.block_until_ready(dense_f32)
    assert dense_f32.dtype == jnp.float32
    assert np.array_equal(np.asarray(dense_f32[:, :, :max_len]), ref2)

    # ---- Larger batch: 128-granular padding (700 -> 768) + >=2 grid steps --
    lens_c = [700, 650, 600, 512, 345, 700, 128, 256,
              640, 700, 699, 300, 512, 444, 555, 666]
    seqs_c = [jax.random.randint(jax.random.fold_in(k4, i), (l,), 1, NUM_AA,
                                 dtype=jnp.int32)
              for i, l in enumerate(lens_c)]
    dense_c, max_len_c = model.embed_lane_dense(seqs_c)   # default tile_l=2048
    dense_c = jax.block_until_ready(dense_c)
    assert max_len_c == 700
    assert dense_c.shape == (16, NUM_AA, 768), dense_c.shape   # L_pad = 768, not 2048

    padded3 = np.zeros((16, max_len_c), dtype=np.int32)
    for b, s in enumerate(seqs_c):
        padded3[b, :lens_c[b]] = np.asarray(s)
    ref3 = (np.arange(NUM_AA, dtype=np.int32)[None, :, None]
            == padded3[:, None, :]).astype(np.float32)
    assert np.array_equal(
        np.asarray(dense_c[:, :, :max_len_c].astype(jnp.float32)), ref3)

    print("KERNEL_OK")
</pallas_src>

<mosaic_0001>
module attributes {stable_mosaic.version = 11 : i64} {
  func.func @_onehot_kernel(%arg0: i32, %arg1: i32, %arg2: memref<2x128xi32, #tpu.memory_space<vmem>>, %arg3: memref<2x21x128xf32, #tpu.memory_space<vmem>>) attributes {dimension_semantics = [#tpu.dimension_semantics<parallel>, #tpu.dimension_semantics<parallel>], iteration_bounds = array<i64: 1, 1>, scalar_prefetch = 0 : i64, scratch_operands = 0 : i64, tpu.core_type = #tpu.core_type<tc>, window_params = [{transform_indices = @transform_0, window_bounds = array<i64: 2, 128>}, {transform_indices = @transform_1, window_bounds = array<i64: 2, 21, 128>}]} {
    %c0 = arith.constant 0 : index
    %c0_0 = arith.constant 0 : index
    %0 = vector.load %arg2[%c0, %c0_0] : memref<2x128xi32, #tpu.memory_space<vmem>>, vector<2x128xi32>
    %1 = tpu.iota {dimensions = array<i32: 1>} : vector<2x21x128xi32>
    %2 = vector.shape_cast %0 : vector<2x128xi32> to vector<2x1x128xi32>
    %3 = vector.broadcast %2 : vector<2x1x128xi32> to vector<2x21x128xi32>
    %4 = arith.cmpi eq, %1, %3 : vector<2x21x128xi32>
    %5 = arith.extui %4 : vector<2x21x128xi1> to vector<2x21x128xi32>
    %6 = arith.sitofp %5 : vector<2x21x128xi32> to vector<2x21x128xf32>
    %c0_1 = arith.constant 0 : index
    %c0_2 = arith.constant 0 : index
    %c0_3 = arith.constant 0 : index
    %7 = vector.load %arg3[%c0_1, %c0_2, %c0_3] : memref<2x21x128xf32, #tpu.memory_space<vmem>>, vector<2x21x128xf32>
    tpu.vector_store %arg3[%c0_1, %c0_2, %c0_3], %6 {strides = array<i32>} : memref<2x21x128xf32, #tpu.memory_space<vmem>>, vector<2x21x128xf32>,
    return
  }
  func.func @transform_0(%arg0: i32, %arg1: i32) -> (i32, i32) {
    %c0_i32 = arith.constant 0 : i32
    return %arg0, %arg1 : i32, i32
  }
  func.func @transform_1(%arg0: i32, %arg1: i32) -> (i32, i32, i32) {
    %c0_i32 = arith.constant 0 : i32
    %c0_i32_0 = arith.constant 0 : i32
    return %arg0, %c0_i32, %arg1 : i32, i32, i32
  }
}

</mosaic_0001>

<bundles_post_ra>
// kernel: tpu_custom_call.1
= control target key start
LH: loop header
LB: loop body
LE: loop exit
PB: predicated region body
PF: predicated region fallthrough
CT: control target
= control target key end

     0   :  { %6 = vsyncpa [#allocation3], 0  ;;  %s118_s6 = smov [#allocation2]   ;;  %s161_s0 = inlined_call_operand.hbm [shape: s32[2,128], index: 0, kind: input, shape index: {}]   ;;  %s162_s1 = inlined_call_operand.vmem [shape: f32[2,21,128], index: 1, kind: output, shape index: {}]  }
   0x1   :  { %s13_s7 = sshll.u32 %s118_s6, 4  ;;  %s94_s10 = scalar_lea.hbm %s161_s0, 32  ;;  %s14_s7 = int_to_ptr.vmem [resolvable:$true] %s13_s7 }
   0x2   :  { %p95_p0 = scmp.ne.s32.totalorder %s161_s0, %s94_s10  ;;  %p98_p1 = scmp.lt.u32.totalorder %s94_s10, %s161_s0 }
   0x4   :  { %p100_p2 = pnand %p98_p1, %p95_p0 }
   0x6   :  { %103 = shalt.err (!%p100_p2)
}
   0x7   :  { %s104_s15 = scalar_lea.vmem %s14_s7, 32  ;;  %p109_p4 = scmp.lt.s32.totalorder %s14_s7, %s14_s7 }
   0x8   :  { %p105_p3 = scmp.ne.s32.totalorder %s14_s7, %s104_s15  ;;  %p110_p5 = scmp.lt.s32.totalorder %s104_s15, %s104_s15 }
   0xa   :  { %p111_p6 = por %p110_p5, %p109_p4 }
   0xc   :  { %p112_p7 = pnand %p111_p6, %p105_p3 }
   0xe   :  { %115 = shalt.err (!%p112_p7)
}
   0xf   :  { %16 = dma.hbm_to_vmem [thread:$0]  %s161_s0, 32, %s14_s7, [#allocation3]  }
  0x10   :  { %116 = dma.done.wait [#allocation3], 32  }
  0x11   :  { %117 = vsyncadd [#allocation3], 4294967264  ;;  %v21_v0 = vlaneseq  ;;  %v119_v1 = vmov 1966171168   ;;  %v120_v15 = vmov 0.0  }
  0x12   :  { %v34_v2 = vunpack.c.l.s4 %v119_v1  ;;  %v84_v7 = vld.sshfl [vmem:[#allocation2] sm:$0x11 pattern:$0x75316420] }
  0x13   :  { %v22_v3 = vshrl.u32 %v21_v0, 7  ;;  %v32_v11 = vcombine.high %v84_v7, %v84_v7 }
  0x14   :  { %v35_v4 = vunpack.c.0.s8 %v34_v2 }
  0x15   :  { %v49_v6 = vsub.s32 0, %v22_v3  ;;  %v23_v9 = vadd.s32 8, %v22_v3  ;;  %v24_v10 = vadd.s32 16, %v22_v3 }
  0x16   :  { %v38_v5 = vsub.s32 %v35_v4, %v22_v3 }
  0x18   :  { %v39_v8 = vrot.slane %v84_v7, %v38_v5  ;;  %v46_v13 = vrot.slane %v32_v11, %v38_v5 }
  0x1a   :  { %v50_v12 = vrot.slane %v39_v8, %v49_v6  ;;  %v54_v14 = vrot.slane %v46_v13, %v49_v6 }
  0x1c   :  { %vm55_vm0 = vcmp.eq.s32.totalorder %v22_v3, %v50_v12  ;;  %vm56_vm1 = vcmp.eq.s32.totalorder %v23_v9, %v50_v12  ;;  %vm57_vm2 = vcmp.eq.s32.totalorder %v24_v10, %v50_v12  ;;  %vm58_vm3 = vcmp.eq.s32.totalorder %v22_v3, %v54_v14 }
  0x1d   :  { %v85_v16 = vsel %vm55_vm0, 1.0, %v120_v15  ;;  %v86_v17 = vsel %vm56_vm1, 1.0, %v120_v15  ;;  %v87_v18 = vsel %vm57_vm2, 1.0, %v120_v15  ;;  %vm59_vm4 = vcmp.eq.s32.totalorder %v23_v9, %v54_v14 }
  0x1e   :  { %73 = vst [vmem:[%s162_s1] sm:$0xff] %v85_v16  ;;  %74 = vst [vmem:[%s162_s1 + $0x8] sm:$0xff] %v86_v17  ;;  %vm60_vm5 = vcmp.eq.s32.totalorder %v24_v10, %v54_v14  ;;  %v88_v19 = vsel %vm58_vm3, 1.0, %v120_v15  ;;  %v89_v20 = vsel %vm59_vm4, 1.0, %v120_v15 }
  0x1f   :  { %75 = vst [vmem:[%s162_s1 + $0x10] sm:$0x1f] %v87_v18  ;;  %v90_v21 = vsel %vm60_vm5, 1.0, %v120_v15  ;;  %76 = vst [vmem:[%s162_s1 + $0x18] sm:$0xff] %v88_v19 }
  0x20   :  { %77 = vst [vmem:[%s162_s1 + $0x20] sm:$0xff] %v89_v20  ;;  %78 = vst [vmem:[%s162_s1 + $0x28] sm:$0x1f] %v90_v21 }
  0x21   :  { %83 = vsyncpa [#allocation3], 1 }

</bundles_post_ra>
